<compile_context>
chip_gen: v5e
topology: v5e:2x2
jax: 0.10.0
libtpu: 0.0.40
codegen_flags: <defaults>
</compile_context>

<pallas_src>
import functools

import jax
import jax.numpy as jnp
from jax.experimental import pallas as pl
from jax.experimental.pallas import tpu as pltpu


def _hloss_kernel(x_ref, o_ref, acc_ref, *, rows, tm, c):
    """Per-row-tile entropy accumulation.

    x_ref:   (tm, c) tile of logits in VMEM (original dtype)
    o_ref:   (1, 1) f32 output (resident across the whole grid)
    acc_ref: (8, c) f32 lane-dense accumulator scratch
    """
    i = pl.program_id(0)

    @pl.when(i == 0)
    def _():
        acc_ref[...] = jnp.zeros_like(acc_ref)

    x = x_ref[...].astype(jnp.float32)
    mx = jnp.max(x, axis=-1, keepdims=True)          # (tm, 1) lane reduce
    s = x - mx
    e = jnp.exp(s)                                    # single exp per element
    denom = jnp.sum(e, axis=-1, keepdims=True)        # (tm, 1) lane reduce
    recip = 1.0 / denom                               # per-row, exact
    lse = jnp.log(denom)                              # per-row

    # Per-row entropy = lse - sum_c(e*s)/denom.  Distribute lse/c over the
    # lanes so the whole tile accumulates with lane-aligned VPU adds.
    contrib = lse * (1.0 / c) - (e * s) * recip       # (tm, c)

    # Mask rows past the true row count (partial trailing tile).
    row_ids = i * tm + jax.lax.broadcasted_iota(jnp.int32, (tm, 1), 0)
    contrib = jnp.where(row_ids < rows, contrib, 0.0)

    # (tm, c) -> (tm//8, 8, c); reduce over leading axis = pure VPU adds.
    acc_ref[...] += jnp.sum(contrib.reshape(tm // 8, 8, c), axis=0)

    @pl.when(i == pl.num_programs(0) - 1)
    def _():
        o_ref[...] = jnp.sum(acc_ref[...], axis=(0, 1), keepdims=True)


@functools.partial(jax.jit, static_argnames=("tm",))
def hloss(x, *, tm=None):
    """Entropy loss: -(softmax(x, -1) * log_softmax(x, -1)).sum(). Returns f32."""
    c = x.shape[-1]
    x2 = x.reshape(-1, c)                 # glue: flatten leading dims
    rows = x2.shape[0]

    # Tiny-input corner: make sure the (single) block's sublane dim is a
    # multiple of 8 without exceeding the array.  Padded rows are masked.
    if rows < 8:
        x2 = jnp.pad(x2, ((0, 8 - rows), (0, 0)))
    n_rows = x2.shape[0]

    if tm is None:
        # Size the row tile against a ~4 MiB per-buffer VMEM budget
        # (double-buffered input => ~8 MiB), capped at 1024 rows.
        bytes_per_row = c * x2.dtype.itemsize
        tm = max(32, min(1024, (4 * 1024 * 1024) // max(bytes_per_row, 1)))
        tm = max(32, (tm // 32) * 32)     # multiple of 32 (bf16/int8 min tile)
    # Clamp to the array and keep a multiple of 8 (f32 min sublane tile).
    tm = max(8, (min(tm, n_rows) // 8) * 8)

    grid = (pl.cdiv(n_rows, tm),)
    kernel = functools.partial(_hloss_kernel, rows=rows, tm=tm, c=c)

    out = pl.pallas_call(
        kernel,
        out_shape=jax.ShapeDtypeStruct((1, 1), jnp.float32),
        grid_spec=pltpu.PrefetchScalarGridSpec(
            num_scalar_prefetch=0,
            grid=grid,
            in_specs=[pl.BlockSpec((tm, c), lambda i: (i, 0))],
            out_specs=pl.BlockSpec((1, 1), lambda i: (0, 0)),
            scratch_shapes=[pltpu.VMEM((8, c), jnp.float32)],
        ),
        compiler_params=pltpu.CompilerParams(
            dimension_semantics=("arbitrary",),   # reduction over row tiles
            vmem_limit_bytes=32 * 1024 * 1024,
        ),
    )(x2)
    return out[0, 0]


def _hloss_ref(x):
    x = x.astype(jnp.float32)
    log_p = jax.nn.log_softmax(x, axis=-1)
    p = jnp.exp(log_p)
    return -jnp.sum(p * log_p)


if __name__ == "__main__":
    key = jax.random.PRNGKey(0)

    # Small shape consistent with the module: arbitrary leading dims, softmax
    # over the last axis.
    x = jax.random.normal(key, (2, 8, 128), dtype=jnp.float32)
    out = jax.block_until_ready(hloss(x))
    ref = _hloss_ref(x)
    assert jnp.allclose(out, ref, rtol=1e-4, atol=1e-4), (out, ref)

    # Row count not a multiple of the tile: exercises the in-kernel row mask.
    x2 = jax.random.normal(jax.random.PRNGKey(1), (3, 5, 128), dtype=jnp.float32)
    out2 = jax.block_until_ready(hloss(x2))
    ref2 = _hloss_ref(x2)
    assert jnp.allclose(out2, ref2, rtol=1e-4, atol=1e-4), (out2, ref2)

    print("KERNEL_OK")
</pallas_src>

<mosaic_0001>
module attributes {stable_mosaic.version = 11 : i64} {
  func.func @_hloss_kernel(%arg0: i32, %arg1: memref<16x128xf32, #tpu.memory_space<vmem>>, %arg2: memref<1x1xf32, #tpu.memory_space<vmem>>, %arg3: memref<8x128xf32, #tpu.memory_space<vmem>>) attributes {dimension_semantics = [#tpu.dimension_semantics<arbitrary>], iteration_bounds = array<i64: 1>, scalar_prefetch = 0 : i64, scratch_operands = 1 : i64, tpu.core_type = #tpu.core_type<tc>, window_params = [{transform_indices = @transform_0, window_bounds = array<i64: 16, 128>}, {pipeline_mode = #tpu.pipeline_mode<synchronous>, transform_indices = @transform_1, window_bounds = array<i64: 1, 1>}]} {
    %c0_i32 = arith.constant 0 : i32
    %0 = arith.cmpi eq, %arg0, %c0_i32 : i32
    %1 = arith.extui %0 : i1 to i32
    %c0_i32_0 = arith.constant 0 : i32
    %2 = arith.cmpi ne, %1, %c0_i32_0 : i32
    scf.if %2 {
      %cst_14 = arith.constant 0.000000e+00 : f32
      %39 = vector.broadcast %cst_14 : f32 to vector<8x128xf32>
      %c0_15 = arith.constant 0 : index
      %c0_16 = arith.constant 0 : index
      %40 = vector.load %arg3[%c0_15, %c0_16] : memref<8x128xf32, #tpu.memory_space<vmem>>, vector<8x128xf32>
      tpu.vector_store %arg3[%c0_15, %c0_16], %39 {strides = array<i32>} : memref<8x128xf32, #tpu.memory_space<vmem>>, vector<8x128xf32>,
    } else {
    }
    %c0 = arith.constant 0 : index
    %c0_1 = arith.constant 0 : index
    %3 = vector.load %arg1[%c0, %c0_1] : memref<16x128xf32, #tpu.memory_space<vmem>>, vector<16x128xf32>
    %cst = arith.constant dense<0xFF800000> : vector<16xf32>
    %4 = vector.multi_reduction <maximumf>, %3, %cst [1] : vector<16x128xf32> to vector<16xf32>
    %5 = vector.shape_cast %4 : vector<16xf32> to vector<16x1xf32>
    %6 = vector.broadcast %5 : vector<16x1xf32> to vector<16x128xf32>
    %7 = arith.subf %3, %6 : vector<16x128xf32>
    %8 = math.exp %7 : vector<16x128xf32>
    %cst_2 = arith.constant dense<0.000000e+00> : vector<16xf32>
    %9 = vector.multi_reduction <add>, %8, %cst_2 [1] : vector<16x128xf32> to vector<16xf32>
    %10 = vector.shape_cast %9 : vector<16xf32> to vector<16x1xf32>
    %cst_3 = arith.constant 1.000000e+00 : f32
    %11 = vector.broadcast %cst_3 : f32 to vector<16x1xf32>
    %12 = arith.divf %11, %10 : vector<16x1xf32>
    %13 = math.log %10 : vector<16x1xf32>
    %cst_4 = arith.constant 7.812500e-03 : f32
    %14 = vector.broadcast %cst_4 : f32 to vector<16x1xf32>
    %15 = arith.mulf %13, %14 : vector<16x1xf32>
    %16 = arith.mulf %8, %7 : vector<16x128xf32>
    %17 = vector.broadcast %12 : vector<16x1xf32> to vector<16x128xf32>
    %18 = arith.mulf %16, %17 : vector<16x128xf32>
    %19 = vector.broadcast %15 : vector<16x1xf32> to vector<16x128xf32>
    %20 = arith.subf %19, %18 : vector<16x128xf32>
    %c16_i32 = arith.constant 16 : i32
    %21 = arith.muli %arg0, %c16_i32 : i32
    %22 = tpu.iota {dimensions = array<i32: 0>} : vector<16x1xi32>
    %23 = vector.broadcast %21 : i32 to vector<16x1xi32>
    %24 = arith.addi %23, %22 : vector<16x1xi32>
    %c16_i32_5 = arith.constant 16 : i32
    %25 = vector.broadcast %c16_i32_5 : i32 to vector<16x1xi32>
    %26 = arith.cmpi slt, %24, %25 : vector<16x1xi32>
    %cst_6 = arith.constant 0.000000e+00 : f32
    %27 = vector.shape_cast %26 : vector<16x1xi1> to vector<16x1xi1>
    %28 = vector.broadcast %27 : vector<16x1xi1> to vector<16x128xi1>
    %29 = vector.broadcast %cst_6 : f32 to vector<16x128xf32>
    %30 = arith.select %28, %20, %29 : vector<16x128xi1>, vector<16x128xf32>
    %c0_7 = arith.constant 0 : index
    %c0_8 = arith.constant 0 : index
    %31 = vector.load %arg3[%c0_7, %c0_8] : memref<8x128xf32, #tpu.memory_space<vmem>>, vector<8x128xf32>
    %32 = vector.shape_cast %30 : vector<16x128xf32> to vector<2x8x128xf32>
    %cst_9 = arith.constant dense<0.000000e+00> : vector<8x128xf32>
    %33 = vector.multi_reduction <add>, %32, %cst_9 [0] : vector<2x8x128xf32> to vector<8x128xf32>
    %34 = arith.addf %31, %33 : vector<8x128xf32>
    %c0_10 = arith.constant 0 : index
    %c0_11 = arith.constant 0 : index
    %35 = vector.load %arg3[%c0_10, %c0_11] : memref<8x128xf32, #tpu.memory_space<vmem>>, vector<8x128xf32>
    tpu.vector_store %arg3[%c0_10, %c0_11], %34 {strides = array<i32>} : memref<8x128xf32, #tpu.memory_space<vmem>>, vector<8x128xf32>,
    %c0_i32_12 = arith.constant 0 : i32
    %36 = arith.cmpi eq, %arg0, %c0_i32_12 : i32
    %37 = arith.extui %36 : i1 to i32
    %c0_i32_13 = arith.constant 0 : i32
    %38 = arith.cmpi ne, %37, %c0_i32_13 : i32
    scf.if %38 {
      %c0_14 = arith.constant 0 : index
      %c0_15 = arith.constant 0 : index
      %39 = vector.load %arg3[%c0_14, %c0_15] : memref<8x128xf32, #tpu.memory_space<vmem>>, vector<8x128xf32>
      %40 = vector.shape_cast %39 : vector<8x128xf32> to vector<1x8x128xf32>
      %cst_16 = arith.constant dense<0.000000e+00> : vector<1xf32>
      %41 = vector.multi_reduction <add>, %40, %cst_16 [1, 2] : vector<1x8x128xf32> to vector<1xf32>
      %42 = vector.shape_cast %41 : vector<1xf32> to vector<1x1x1xf32>
      %43 = vector.extract %42[0, 0, 0] : f32 from vector<1x1x1xf32>
      %44 = vector.broadcast %43 : f32 to vector<1x1xf32>
      %c0_17 = arith.constant 0 : index
      %c0_18 = arith.constant 0 : index
      %45 = vector.load %arg2[%c0_17, %c0_18] : memref<1x1xf32, #tpu.memory_space<vmem>>, vector<1x1xf32>
      tpu.vector_store %arg2[%c0_17, %c0_18], %44 {strides = array<i32>} : memref<1x1xf32, #tpu.memory_space<vmem>>, vector<1x1xf32>,
    } else {
    }
    return
  }
  func.func @transform_0(%arg0: i32) -> (i32, i32) {
    %c0_i32 = arith.constant 0 : i32
    %c0_i32_0 = arith.constant 0 : i32
    return %arg0, %c0_i32 : i32, i32
  }
  func.func @transform_1(%arg0: i32) -> (i32, i32) {
    %c0_i32 = arith.constant 0 : i32
    %c0_i32_0 = arith.constant 0 : i32
    %c0_i32_1 = arith.constant 0 : i32
    return %c0_i32, %c0_i32_0 : i32, i32
  }
}

</mosaic_0001>

<bundles_post_ra>
// kernel: hloss.1
= control target key start
LH: loop header
LB: loop body
LE: loop exit
PB: predicated region body
PF: predicated region fallthrough
CT: control target
= control target key end

     0   :  { %6 = vsyncpa [#allocation4], 0  ;;  %s230_s0 = inlined_call_operand.hbm [shape: f32[16,128], index: 0, kind: input, shape index: {}]   ;;  %s231_s1 = inlined_call_operand.hbm [shape: f32[1,1], index: 1, kind: output, shape index: {}]  }
   0x1   :  { %7 = vsyncpa [#allocation5], 0  ;;  %s12_s8 = sshll.u32 %s230_s0, 4  ;;  %s210_s9 = smov [#allocation3]   ;;  %s13_s8 = int_to_ptr.hbm [resolvable:$true] %s12_s8 }
   0x2   :  { %s14_s10 = sshll.u32 %s210_s9, 4  ;;  %s211_s11 = smov 128   ;;  %s15_s10 = int_to_ptr.vmem [resolvable:$true] %s14_s10 }
   0x3   :  { %s212_s12 = smov 8  }
   0x4   :  { %20 = dma.hbm_to_vmem [thread:$0]  %s13_s8, 256, %s15_s10, [#allocation4], %s211_s11, %s211_s11, %s212_s12  }
   0x5   :  { %206 = dma.done.wait [#allocation4], 256  }
   0x6   :  { %207 = vsyncadd [#allocation4], 4294967040  ;;  %v30_v0 = vld [vmem:[#allocation3] sm:$0xff]  ;;  %v31_v1 = vld [vmem:[#allocation3 + $0x8] sm:$0xff]  ;;  %s130_s14 = sshll.u32 %s231_s1, 4  ;;  %s213_s15 = smov [#allocation6]   ;;  %s131_s14 = int_to_ptr.hbm [resolvable:$true] %s130_s14 }
   0x7   :  { %32 = vmax.xlane.f32.xlu0 %v30_v0  ;;  %s128_s16 = sshll.u32 %s213_s15, 4  ;;  %vm121_vm8 = vcmask 0   ;;  %s129_s16 = int_to_ptr.vmem [resolvable:$true] %s128_s16 }
   0xf   :  { %34 = vmax.xlane.f32.xlu0 %v31_v1 }
  0x7a   :  { %v33_v2 = vpop.xlane.xlu0 %32 }
  0x7b   :  { %v36_v3 = vsub.f32 %v30_v0, %v33_v2 }
  0x7d   :  { %v38_v4 = vmul.f32 1.442695, %v36_v3 }
  0x7f   :  { %146 = vpow2.f32 %v38_v4 }
  0x82   :  { %v35_v5 = vpop.xlane.xlu0 %34 }
  0x83   :  { %v37_v6 = vsub.f32 %v31_v1, %v35_v5 }
  0x85   :  { %v147_v7 = vpop.eup %146  ;;  %v40_v8 = vmul.f32 1.442695, %v37_v6 }
  0x86   :  { %v82_v9 = vmul.f32 %v147_v7, %v36_v3  ;;  %42 = vadd.xlane.f32.xlu1 %v147_v7 }
  0x87   :  { %148 = vpow2.f32 %v40_v8 }
  0x8d   :  { %v149_v10 = vpop.eup %148 }
  0x8e   :  { %v83_v11 = vmul.f32 %v149_v10, %v37_v6  ;;  %44 = vadd.xlane.f32.xlu1 %v149_v10 }
  0xf9   :  { %v43_v12 = vpop.xlane.xlu1 %42 }
  0xfa   :  { %150 = vrcp.f32 %v43_v12  ;;  %v57_v20 = vand.u32 2147483648, %v43_v12  ;;  %vm51_vm1 = vweird.f32 %v43_v12  ;;  %v55_v22 = vand.u32 2147483647, %v43_v12 }
  0xfc   :  { %v58_v28 = vor.u32 1.1754944e-38, %v57_v20  ;;  %vm56_vm3 = vcmp.eq.f32.partialorder %v55_v22, 8.507059e+37 }
 0x100   :  { %v151_v13 = vpop.eup %150 }
 0x101   :  { %v47_v14 = vmul.f32 %v151_v13, %v43_v12  ;;  %v45_v15 = vpop.xlane.xlu1 %44  ;;  %vm52_vm0 = vweird.f32 %v151_v13 }
 0x102   :  { %152 = vrcp.f32 %v45_v15  ;;  %vm53_vm2 = vmor %vm51_vm1, %vm52_vm0  ;;  %v72_v27 = vand.u32 2147483648, %v45_v15  ;;  %v70_v30 = vand.u32 2147483647, %v45_v15  ;;  %vm66_vm5 = vweird.f32 %v45_v15 }
 0x103   :  { %v48_v16 = vsub.f32 1.0, %v47_v14  ;;  %154 = vlog2.f32 %v43_v12 }
 0x104   :  { %156 = vlog2.f32 %v45_v15  ;;  %v73_v35 = vor.u32 1.1754944e-38, %v72_v27  ;;  %vm71_vm7 = vcmp.eq.f32.partialorder %v70_v30, 8.507059e+37 }
 0x105   :  { %v49_v17 = vmul.f32 %v151_v13, %v48_v16 }
 0x107   :  { %v50_v18 = vadd.f32 %v151_v13, %v49_v17 }
 0x108   :  { %v153_v19 = vpop.eup %152 }
 0x109   :  { %v62_v21 = vmul.f32 %v153_v19, %v45_v15  ;;  %v155_v23 = vpop.eup %154  ;;  %v54_v25 = vsel %vm53_vm2, %v151_v13, %v50_v18  ;;  %vm67_vm4 = vweird.f32 %v153_v19 }
 0x10a   :  { %v157_v26 = vpop.eup %156  ;;  %v59_v31 = vsel %vm56_vm3, %v58_v28, %v54_v25  ;;  %v77_v33 = vmul.f32 0.6931472, %v155_v23  ;;  %vm68_vm6 = vmor %vm66_vm5, %vm67_vm4 }
 0x10b   :  { %v63_v24 = vsub.f32 1.0, %v62_v21  ;;  %v79_v34 = vmul.f32 0.6931472, %v157_v26  ;;  %v84_v37 = vmul.f32 %v82_v9, %v59_v31 }
 0x10c   :  { %v80_v39 = vmul.f32 0.0078125, %v77_v33 }
 0x10d   :  { %v64_v29 = vmul.f32 %v153_v19, %v63_v24  ;;  %v81_v40 = vmul.f32 0.0078125, %v79_v34 }
 0x10e   :  { %v86_v42 = vsub.f32 %v80_v39, %v84_v37 }
 0x10f   :  { %v65_v32 = vadd.f32 %v153_v19, %v64_v29 }
 0x111   :  { %v69_v36 = vsel %vm68_vm6, %v153_v19, %v65_v32 }
 0x112   :  { %v74_v38 = vsel %vm71_vm7, %v73_v35, %v69_v36 }
 0x113   :  { %v85_v41 = vmul.f32 %v83_v11, %v74_v38 }
 0x115   :  { %v87_v43 = vsub.f32 %v81_v40, %v85_v41 }
 0x117   :  { %v104_v44 = vadd.f32 %v87_v43, %v86_v42 }
 0x119   :  { %111 = vadd.xlane.f32.xlu2 %v104_v44 }
 0x18c   :  { %v112_v45 = vpop.xlane.xlu2 %111 }
 0x18d   :  { %v113_v46 = vrot.slane %v112_v45, 4 }
 0x18f   :  { %v114_v47 = vadd.f32 %v113_v46, %v112_v45 }
 0x191   :  { %v115_v48 = vrot.slane %v114_v47, 2 }
 0x193   :  { %v116_v49 = vadd.f32 %v115_v48, %v114_v47 }
 0x195   :  { %v117_v50 = vrot.slane %v116_v49, 1 }
 0x197   :  { %v118_v51 = vadd.f32 %v117_v50, %v116_v49 }
 0x199   :  { %140 = vpush %v118_v51 }
 0x1ca   :  { %s141_s17 = spop %140 }
 0x1cb   :  { %v120_v52 = vstv %s141_s17 }
 0x1cc   :  { %122 = vst.msk [vmem:[#allocation6] sm:$0x1] %vm121_vm8, %v120_v52 }
 0x1cd   :  { %133 = dma.vmem_to_hbm [thread:$0]  %s129_s16, 16, %s131_s14, [#allocation5]  }
 0x1ce   :  { %208 = dma.done.wait [#allocation5], 16  }
 0x1cf   :  { %209 = vsyncadd [#allocation5], 4294967280 }
 0x1d0   :  { %138 = vsyncpa [#allocation4], 1 }
 0x1d1   :  { %139 = vsyncpa [#allocation5], 1 }

</bundles_post_ra>
